<compile_context>
chip_gen: v5e
topology: v5e:2x2
jax: 0.10.0
libtpu: 0.0.40
codegen_flags: <defaults>
</compile_context>

<pallas_src>
import functools
import numpy as np
import jax
import jax.numpy as jnp
from jax.experimental import pallas as pl
from jax.experimental.pallas import tpu as pltpu

TILE_R = 512  # max row tile (sublane-aligned); sweep 512-2048 on big inputs


# ------------------------------ tiling helpers ------------------------------

def _round_up(x, m):
    return -(-x // m) * m


def _tile_and_pad(rows):
    """Choose a row tile and the padded row count.

    Big inputs use TILE_R; smaller inputs are split into (at least) two
    128-aligned tiles so both v7x TensorCores get a grid step.
    """
    if rows >= 2 * TILE_R:
        tile = TILE_R
    else:
        half = -(-rows // 2)
        tile = max(128, _round_up(half, 128))
    padded = _round_up(rows, tile)
    return tile, padded


def _pad_rows(x, rows_p):
    r = x.shape[0]
    if rows_p == r:
        return x
    return jnp.pad(x, ((0, rows_p - r), (0, 0)))


# ----------------------------- Pallas kernels -------------------------------

def _mlp2_kernel(x_ref, w0_ref, b0_ref, w1_ref, b1_ref, o_ref):
    # Fused PointNetStacker: relu(relu(x@W0+b0)@W1+b1); intermediate stays in vregs.
    h = jnp.dot(x_ref[...], w0_ref[...], preferred_element_type=jnp.float32)
    h = jnp.maximum(h + b0_ref[...], 0.0).astype(w1_ref.dtype)
    y = jnp.dot(h, w1_ref[...], preferred_element_type=jnp.float32)
    y = jnp.maximum(y + b1_ref[...], 0.0)
    o_ref[...] = y.astype(o_ref.dtype)


def _stem_heads_kernel(x_ref, ws_ref, bs_ref, wsem_ref, bsem_ref,
                       wins_ref, bins_ref, sem_ref, ins_ref):
    # view_net: stem -> two heads; stem output never touches HBM.
    h = jnp.dot(x_ref[...], ws_ref[...], preferred_element_type=jnp.float32)
    h = jnp.maximum(h + bs_ref[...], 0.0).astype(wsem_ref.dtype)
    s = jnp.dot(h, wsem_ref[...], preferred_element_type=jnp.float32)
    sem_ref[...] = jnp.maximum(s + bsem_ref[...], 0.0).astype(sem_ref.dtype)
    t = jnp.dot(h, wins_ref[...], preferred_element_type=jnp.float32)
    ins_ref[...] = jnp.maximum(t + bins_ref[...], 0.0).astype(ins_ref.dtype)


def _ce_fuse_kernel(f_ref, r_ref, wsa_ref, wsb_ref, bs_ref,
                    wia_ref, wib_ref, bi_ref, sem_ref, ins_ref):
    # concat([f, r], C) @ W == f@Wa + r@Wb  (per branch), bias + ReLU.
    f = f_ref[...]
    r = r_ref[...]
    s = jnp.dot(f, wsa_ref[...], preferred_element_type=jnp.float32)
    s = s + jnp.dot(r, wsb_ref[...], preferred_element_type=jnp.float32)
    sem_ref[...] = jnp.maximum(s + bs_ref[...], 0.0).astype(sem_ref.dtype)
    t = jnp.dot(f, wia_ref[...], preferred_element_type=jnp.float32)
    t = t + jnp.dot(r, wib_ref[...], preferred_element_type=jnp.float32)
    ins_ref[...] = jnp.maximum(t + bi_ref[...], 0.0).astype(ins_ref.dtype)


def _mvfuse_kernel(pt_ref, pbs_ref, prs_ref, pbi_ref, pri_ref,
                   ws1_ref, ws2_ref, ws3_ref, bs_ref,
                   wi1_ref, wi2_ref, wi3_ref, bi_ref,
                   wps_ref, wpo_ref, bp_ref,
                   fsem_ref, pred_ref, *, hmap_col):
    # fuse3(sem), fuse3(ins) and the packed prediction heads, all in one pass.
    fs = jnp.dot(pt_ref[...], ws1_ref[...], preferred_element_type=jnp.float32)
    fs = fs + jnp.dot(pbs_ref[...], ws2_ref[...], preferred_element_type=jnp.float32)
    fs = fs + jnp.dot(prs_ref[...], ws3_ref[...], preferred_element_type=jnp.float32)
    fs = jnp.maximum(fs + bs_ref[...], 0.0)
    fsem_ref[...] = fs.astype(fsem_ref.dtype)

    fi = jnp.dot(pt_ref[...], wi1_ref[...], preferred_element_type=jnp.float32)
    fi = fi + jnp.dot(pbi_ref[...], wi2_ref[...], preferred_element_type=jnp.float32)
    fi = fi + jnp.dot(pri_ref[...], wi3_ref[...], preferred_element_type=jnp.float32)
    fi = jnp.maximum(fi + bi_ref[...], 0.0)

    # lane-dense packed heads: cols [0:ncls]=sem, [ncls:ncls+3]=offset, [ncls+3]=hmap.
    slab = jnp.dot(fs.astype(wps_ref.dtype), wps_ref[...],
                   preferred_element_type=jnp.float32)
    slab = slab + jnp.dot(fi.astype(wpo_ref.dtype), wpo_ref[...],
                          preferred_element_type=jnp.float32)
    slab = slab + bp_ref[...]
    col = jax.lax.broadcasted_iota(jnp.int32, slab.shape, 1)
    slab = jnp.where(col == hmap_col, jax.nn.sigmoid(slab), slab)
    pred_ref[...] = slab.astype(pred_ref.dtype)


# --------------------------- Pallas call wrappers ----------------------------

def _full(shape):
    return pl.BlockSpec(shape, lambda i: (0, 0))


def pallas_mlp2(x, p0, p1):
    """Fused PointNetStacker (stack_num=2): (R, Cin) -> (R, C0), bf16 out."""
    w0, b0 = p0
    w1, b1 = p1
    R, Cin = x.shape
    C0 = w1.shape[1]
    tile, rp = _tile_and_pad(R)
    xp = _pad_rows(x, rp)
    out = pl.pallas_call(
        _mlp2_kernel,
        out_shape=jax.ShapeDtypeStruct((rp, C0), jnp.bfloat16),
        grid_spec=pltpu.PrefetchScalarGridSpec(
            num_scalar_prefetch=0,
            grid=(rp // tile,),
            in_specs=[
                pl.BlockSpec((tile, Cin), lambda i: (i, 0)),
                _full(w0.shape), _full(b0.shape),
                _full(w1.shape), _full(b1.shape),
            ],
            out_specs=pl.BlockSpec((tile, C0), lambda i: (i, 0)),
        ),
        compiler_params=pltpu.CompilerParams(dimension_semantics=("parallel",)),
    )(xp, w0, b0, w1, b1)
    return out[:R]


def pallas_stem_heads(x, p):
    """view_net head: stem + {sem, ins} branches in one kernel."""
    ws, bs = p["stem"]
    wsem, bsem = p["sem"]
    wins, bins = p["ins"]
    R, Cin = x.shape
    Cout = wsem.shape[1]
    tile, rp = _tile_and_pad(R)
    xp = _pad_rows(x, rp)
    sem, ins = pl.pallas_call(
        _stem_heads_kernel,
        out_shape=(jax.ShapeDtypeStruct((rp, Cout), jnp.bfloat16),
                   jax.ShapeDtypeStruct((rp, Cout), jnp.bfloat16)),
        grid_spec=pltpu.PrefetchScalarGridSpec(
            num_scalar_prefetch=0,
            grid=(rp // tile,),
            in_specs=[
                pl.BlockSpec((tile, Cin), lambda i: (i, 0)),
                _full(ws.shape), _full(bs.shape),
                _full(wsem.shape), _full(bsem.shape),
                _full(wins.shape), _full(bins.shape),
            ],
            out_specs=(pl.BlockSpec((tile, Cout), lambda i: (i, 0)),
                       pl.BlockSpec((tile, Cout), lambda i: (i, 0))),
        ),
        compiler_params=pltpu.CompilerParams(dimension_semantics=("parallel",)),
    )(xp, ws, bs, wsem, bsem, wins, bins)
    return sem[:R], ins[:R]


def pallas_ce_fuse(f, r, p):
    """Cross-entity fusion (double branch): concat + 1x1 conv + ReLU, fused."""
    wsa, wsb, bs = p["sem"]
    wia, wib, bi = p["ins"]
    R, Cf = f.shape
    Cr = r.shape[1]
    Cout = wsa.shape[1]
    tile, rp = _tile_and_pad(R)
    fp = _pad_rows(f, rp)
    rpad = _pad_rows(r, rp)
    sem, ins = pl.pallas_call(
        _ce_fuse_kernel,
        out_shape=(jax.ShapeDtypeStruct((rp, Cout), jnp.bfloat16),
                   jax.ShapeDtypeStruct((rp, Cout), jnp.bfloat16)),
        grid_spec=pltpu.PrefetchScalarGridSpec(
            num_scalar_prefetch=0,
            grid=(rp // tile,),
            in_specs=[
                pl.BlockSpec((tile, Cf), lambda i: (i, 0)),
                pl.BlockSpec((tile, Cr), lambda i: (i, 0)),
                _full(wsa.shape), _full(wsb.shape), _full(bs.shape),
                _full(wia.shape), _full(wib.shape), _full(bi.shape),
            ],
            out_specs=(pl.BlockSpec((tile, Cout), lambda i: (i, 0)),
                       pl.BlockSpec((tile, Cout), lambda i: (i, 0))),
        ),
        compiler_params=pltpu.CompilerParams(dimension_semantics=("parallel",)),
    )(fp, rpad, wsa, wsb, bs, wia, wib, bi)
    return sem[:R], ins[:R]


def pallas_mvfuse(pt, pbs, prs, pbi, pri, p, ncls):
    """MVFuse: 2x fuse3 + all prediction heads in one kernel.

    Returns (point_feat_sem (R, Cp) bf16, pred slab (R, >=128) f32)."""
    ws1, ws2, ws3, bs = p["post_sem"]
    wi1, wi2, wi3, bi = p["post_ins"]
    wps, wpo, bp = p["pred_pack"]
    Cp = ws1.shape[1]
    pred_w = wps.shape[1]
    R = pt.shape[0]
    tile, rp = _tile_and_pad(R)
    pt_p = _pad_rows(pt, rp)
    pbs_p = _pad_rows(pbs, rp)
    prs_p = _pad_rows(prs, rp)
    pbi_p = _pad_rows(pbi, rp)
    pri_p = _pad_rows(pri, rp)

    fsem, pred = pl.pallas_call(
        functools.partial(_mvfuse_kernel, hmap_col=ncls + 3),
        out_shape=(jax.ShapeDtypeStruct((rp, Cp), jnp.bfloat16),
                   jax.ShapeDtypeStruct((rp, pred_w), jnp.float32)),
        grid_spec=pltpu.PrefetchScalarGridSpec(
            num_scalar_prefetch=0,
            grid=(rp // tile,),
            in_specs=[
                pl.BlockSpec((tile, pt.shape[1]), lambda i: (i, 0)),
                pl.BlockSpec((tile, pbs.shape[1]), lambda i: (i, 0)),
                pl.BlockSpec((tile, prs.shape[1]), lambda i: (i, 0)),
                pl.BlockSpec((tile, pbi.shape[1]), lambda i: (i, 0)),
                pl.BlockSpec((tile, pri.shape[1]), lambda i: (i, 0)),
                _full(ws1.shape), _full(ws2.shape), _full(ws3.shape), _full(bs.shape),
                _full(wi1.shape), _full(wi2.shape), _full(wi3.shape), _full(bi.shape),
                _full(wps.shape), _full(wpo.shape), _full(bp.shape),
            ],
            out_specs=(pl.BlockSpec((tile, Cp), lambda i: (i, 0)),
                       pl.BlockSpec((tile, pred_w), lambda i: (i, 0))),
        ),
        compiler_params=pltpu.CompilerParams(dimension_semantics=("parallel",)),
    )(pt_p, pbs_p, prs_p, pbi_p, pri_p,
      ws1, ws2, ws3, bs, wi1, wi2, wi3, bi, wps, wpo, bp)
    return fsem[:R], pred[:R]


# ------------------------------ JAX glue ops --------------------------------
# TODO(synk): VoxelMaxPool / grid2point / reproj are data-dependent scatter,
# gather and projection ops; kept in plain JAX (no clean BlockSpec form).

def voxel_max_pool(feat_bnc, pcds_ind, output_size):
    """feat (B,N,C) channel-last, pcds_ind (B,N,>=2,1) -> grid (B,H,W,C) scatter-max."""
    # TODO(synk): zero-init scatter-max clamps negative maxima; benign for ReLU features.
    B, N, C = feat_bnc.shape
    H, W = output_size
    ix = jnp.floor(pcds_ind[:, :, 0, 0]).astype(jnp.int32)
    iy = jnp.floor(pcds_ind[:, :, 1, 0]).astype(jnp.int32)
    valid = (ix >= 0) & (ix < H) & (iy >= 0) & (iy < W)
    lin = jnp.where(valid, ix * W + iy, H * W)                        # dump bin

    def per_b(f, l):
        grid = jnp.zeros((H * W + 1, C), feat_bnc.dtype)
        grid = grid.at[l].max(f)
        return grid[:H * W].reshape(H, W, C)

    return jax.vmap(per_b)(feat_bnc, lin)                             # (B, H, W, C)


def grid2point(grid_bhwc, pcds_ind):
    """Nearest-neighbor gather  (B,H,W,C) x (B,N,2,1) -> (B,N,C)."""
    # TODO(synk): original bev/rv_grid2point may be bilinear sampling; nearest used.
    B, H, W, C = grid_bhwc.shape
    ix = jnp.clip(jnp.floor(pcds_ind[:, :, 0, 0]).astype(jnp.int32), 0, H - 1)
    iy = jnp.clip(jnp.floor(pcds_ind[:, :, 1, 0]).astype(jnp.int32), 0, W - 1)
    return jax.vmap(lambda g, x, y: g[x, y, :])(grid_bhwc, ix, iy)


def reproj(xyz, cfg):
    """Re-project shifted xyz into BEV / RV grid coordinates. xyz: (B,N,3)."""
    # TODO(synk): exact common_utils.reproj convention unavailable; standard projection.
    x, y, z = xyz[..., 0], xyz[..., 1], xyz[..., 2]
    dx = (cfg["range_x"][1] - cfg["range_x"][0]) / cfg["bev_shape"][0]
    dy = (cfg["range_y"][1] - cfg["range_y"][0]) / cfg["bev_shape"][1]
    x_quan = jnp.floor((x - cfg["range_x"][0]) / dx)
    y_quan = jnp.floor((y - cfg["range_y"][0]) / dy)
    d = jnp.sqrt(x * x + y * y + z * z) + 1e-12
    phi = jnp.arctan2(y, x)
    theta = jnp.arcsin(jnp.clip(z / d, -1.0, 1.0))
    theta_min = cfg["rv_theta_deg"][0] * np.pi / 180.0
    theta_max = cfg["rv_theta_deg"][1] * np.pi / 180.0
    dphi = (2.0 * np.pi) / cfg["rv_shape"][1]
    dtheta = (theta_max - theta_min) / cfg["rv_shape"][0]
    phi_quan = jnp.floor((phi + np.pi) / dphi)
    theta_quan = jnp.floor((theta_max - theta) / dtheta)
    coord_wl = jnp.stack([x_quan, y_quan], axis=-1)[..., None]        # (B,N,2,1)
    sphere = jnp.stack([theta_quan, phi_quan], axis=-1)[..., None]    # (B,N,2,1)
    return coord_wl, sphere


# --------------------------- network sub-modules ----------------------------

def view_net(params, grid_bhwc):
    """Simplified BEVNet / RVNet double-branch head (fused per-cell MLP)."""
    # TODO(synk): real BEVNet/RVNet are multi-scale CNNs (defs not provided); per-cell MLP stand-in.
    B, H, W, C = grid_bhwc.shape
    x = grid_bhwc.reshape(B * H * W, C)
    sem, ins = pallas_stem_heads(x, params)
    return sem.reshape(B, H, W, -1), ins.reshape(B, H, W, -1)


def ce_fuse(params, feat, reproj_feat):
    """Cross-entity fusion (double branch): concat + 1x1 conv + ReLU, fused kernel."""
    # TODO(synk): ce_fusion_mode (common_utils.*) unspecified; concat+conv used.
    B, H, W, C = feat.shape
    f = feat.reshape(B * H * W, C)
    r = reproj_feat.reshape(B * H * W, -1)
    sem, ins = pallas_ce_fuse(f, r, params)
    return sem.reshape(B, H, W, -1), ins.reshape(B, H, W, -1)


def mv_fuse(params, pt_flat, B, N, bev_sem, bev_ins, coord_bev,
            rv_sem, rv_ins, coord_rv, ncls):
    """MVFuse forward (fusion + prediction branches) — one fused Pallas kernel."""
    pb_sem = grid2point(bev_sem, coord_bev).reshape(B * N, -1)
    pr_sem = grid2point(rv_sem, coord_rv).reshape(B * N, -1)
    pb_ins = grid2point(bev_ins, coord_bev).reshape(B * N, -1)
    pr_ins = grid2point(rv_ins, coord_rv).reshape(B * N, -1)

    fsem, pred = pallas_mvfuse(pt_flat, pb_sem, pr_sem, pb_ins, pr_ins, params, ncls)

    point_feat_sem = fsem.reshape(B, N, -1)                                  # (B,N,Cp) bf16
    pred_sem = pred[:, :ncls].reshape(B, N, ncls).transpose(0, 2, 1)[..., None]
    pred_offset = pred[:, ncls:ncls + 3].reshape(B, N, 3)
    pred_hmap = pred[:, ncls + 3:ncls + 4].reshape(B, N, 1)
    return point_feat_sem, pred_sem, pred_offset, pred_hmap


def forward_once(params, point_feat, pcds_coord, pcds_sphere_coord, cfg):
    B, Cin, N, _ = point_feat.shape
    ncls = cfg["n_class"]
    coord_wl = pcds_coord[:, :, :2]                                          # (B,N,2,1)

    # point_pre: PointNetStacker(7 -> C0), stack_num=2 (BN folded), fused kernel
    x = point_feat[..., 0].transpose(0, 2, 1).reshape(B * N, Cin).astype(jnp.bfloat16)
    pt_flat = pallas_mlp2(x, params["pre0"], params["pre1"])                 # (B*N, C0) bf16
    C0 = pt_flat.shape[1]
    pt_bnc = pt_flat.reshape(B, N, C0)

    rv_input = voxel_max_pool(pt_bnc, pcds_sphere_coord, cfg["rv_shape"])
    rv_sem, rv_ins = view_net(params["rv_net"], rv_input)
    bev_input = voxel_max_pool(pt_bnc, coord_wl, cfg["bev_shape"])
    bev_sem, bev_ins = view_net(params["bev_net"], bev_input)

    pfs0, psem0, poff0, phmap0 = mv_fuse(
        params["mv0"], pt_flat, B, N, bev_sem, bev_ins, coord_wl,
        rv_sem, rv_ins, pcds_sphere_coord, ncls)

    valid = (phmap0 > cfg["score_thresh"])[..., 0]                           # (B,N)
    xyz = point_feat[:, :3, :, 0].transpose(0, 2, 1) + jax.lax.stop_gradient(poff0)
    coord_wl_re, sphere_re = reproj(xyz, cfg)
    coord_wl_re = jnp.where(valid[..., None, None], coord_wl_re, -1.0)
    sphere_re = jnp.where(valid[..., None, None], sphere_re, -1.0)

    rv_reproj = voxel_max_pool(pfs0, sphere_re, cfg["rv_shape"])
    bev_reproj = voxel_max_pool(pfs0, coord_wl_re, cfg["bev_shape"])

    rv_sem_f, rv_ins_f = ce_fuse(params["rv_fuse0"], rv_sem, rv_reproj)
    bev_sem_f, bev_ins_f = ce_fuse(params["bev_fuse0"], bev_sem, bev_reproj)

    _, psem1, poff1, phmap1 = mv_fuse(
        params["mv1"], pt_flat, B, N, bev_sem_f, bev_ins_f, coord_wl,
        rv_sem_f, rv_ins_f, pcds_sphere_coord, ncls)

    return psem0, poff0, phmap0, psem1, poff1, phmap1


def infer(params, pcds_xyzi, pcds_coord, pcds_sphere_coord, cfg):
    """AttNet.infer: returns (pred_sem1 (B,cls,N,1), pred_offset1 (B,N,3), pred_hmap1 (B,N,1))."""
    _, _, _, psem1, poff1, phmap1 = forward_once(params, pcds_xyzi, pcds_coord,
                                                 pcds_sphere_coord, cfg)
    return psem1, poff1, phmap1
    # TODO(synk): training `forward` (panoptic/consistency losses) not implemented — loss
    #             module definitions are not provided; infer path only.


# ------------------------------ parameters ----------------------------------

def _lin_init(key, cin, cout, scale=0.1):
    kw, kb = jax.random.split(key)
    w = (scale * jax.random.normal(kw, (cin, cout), jnp.float32)).astype(jnp.bfloat16)
    b = (scale * jax.random.normal(kb, (1, cout), jnp.float32))
    return w, b


def _lin_raw(key, cin, cout, scale=0.1):
    kw, kb = jax.random.split(key)
    return (scale * jax.random.normal(kw, (cin, cout), jnp.float32),
            scale * jax.random.normal(kb, (cout,), jnp.float32))


def _fuse3_init(key, c1, c2, c3, cout, scale=0.1):
    k1, k2, k3, kb = jax.random.split(key, 4)
    return ((scale * jax.random.normal(k1, (c1, cout), jnp.float32)).astype(jnp.bfloat16),
            (scale * jax.random.normal(k2, (c2, cout), jnp.float32)).astype(jnp.bfloat16),
            (scale * jax.random.normal(k3, (c3, cout), jnp.float32)).astype(jnp.bfloat16),
            scale * jax.random.normal(kb, (1, cout), jnp.float32))


def _ce_branch_init(key, c_view, c_pt, scale=0.1):
    k1, k2, kb = jax.random.split(key, 3)
    return ((scale * jax.random.normal(k1, (c_view, c_view), jnp.float32)).astype(jnp.bfloat16),
            (scale * jax.random.normal(k2, (c_pt, c_view), jnp.float32)).astype(jnp.bfloat16),
            scale * jax.random.normal(kb, (1, c_view), jnp.float32))


def _pack_pred(wsem, bsem, woff, boff, whm, bhm, ncls):
    """Pack the three prediction heads into one lane-dense (>=128-wide) slab."""
    cp = wsem.shape[0]
    width = max(128, _round_up(ncls + 4, 128))
    wps = jnp.zeros((cp, width), jnp.float32).at[:, :ncls].set(wsem)
    wpo = jnp.zeros((cp, width), jnp.float32)
    wpo = wpo.at[:, ncls:ncls + 3].set(woff)
    wpo = wpo.at[:, ncls + 3:ncls + 4].set(whm)
    bp = jnp.zeros((1, width), jnp.float32)
    bp = bp.at[0, :ncls].set(bsem)
    bp = bp.at[0, ncls:ncls + 3].set(boff)
    bp = bp.at[0, ncls + 3].set(bhm[0])
    return wps.astype(jnp.bfloat16), wpo.astype(jnp.bfloat16), bp


def init_params(key, cfg):
    ks = iter(jax.random.split(key, 128))
    C0, Cb, Cr, Cp, ncls = cfg["C0"], cfg["C_bev"], cfg["C_rv"], cfg["C_pt"], cfg["n_class"]

    def mv_params():
        wsem, bsem = _lin_raw(next(ks), Cp, ncls)
        woff, boff = _lin_raw(next(ks), Cp, 3)
        whm, bhm = _lin_raw(next(ks), Cp, 1)
        return dict(
            post_sem=_fuse3_init(next(ks), C0, Cb, Cr, Cp),
            post_ins=_fuse3_init(next(ks), C0, Cb, Cr, Cp),
            pred_pack=_pack_pred(wsem, bsem, woff, boff, whm, bhm, ncls),
        )

    def view_params(c):
        return dict(stem=_lin_init(next(ks), C0, c),
                    sem=_lin_init(next(ks), c, c),
                    ins=_lin_init(next(ks), c, c))

    def ce_params(c):
        return dict(sem=_ce_branch_init(next(ks), c, Cp),
                    ins=_ce_branch_init(next(ks), c, Cp))

    return dict(
        pre0=_lin_init(next(ks), cfg["C_in"], C0),
        pre1=_lin_init(next(ks), C0, C0),
        bev_net=view_params(Cb),
        rv_net=view_params(Cr),
        mv0=mv_params(),
        mv1=mv_params(),
        bev_fuse0=ce_params(Cb),
        rv_fuse0=ce_params(Cr),
    )


# --------------------------------- main --------------------------------------

if __name__ == "__main__":
    CFG = dict(
        BS=2, N=128, C_in=7,
        C0=32, C_bev=32, C_rv=32, C_pt=64, n_class=12,
        bev_shape=(16, 16), rv_shape=(8, 16),
        range_x=(-10.0, 10.0), range_y=(-10.0, 10.0),
        rv_theta_deg=(-25.0, 3.0),
        score_thresh=0.5,
    )
    B, N = CFG["BS"], CFG["N"]

    key = jax.random.PRNGKey(0)
    kp, k1, k2, k3 = jax.random.split(key, 4)
    params = init_params(kp, CFG)

    # pcds_xyzi (B,7,N,1): x,y,z in range, rest ~ N(0,1)
    xyz = jax.random.uniform(k1, (B, 3, N, 1), jnp.float32, -9.0, 9.0)
    other = jax.random.normal(k2, (B, 4, N, 1), jnp.float32)
    pcds_xyzi = jnp.concatenate([xyz, other], axis=1)

    # quantized coordinates (float-valued integer grid coords)
    kx, ky, kz, kt, kph = jax.random.split(k3, 5)
    x_q = jax.random.randint(kx, (B, N), 0, CFG["bev_shape"][0]).astype(jnp.float32)
    y_q = jax.random.randint(ky, (B, N), 0, CFG["bev_shape"][1]).astype(jnp.float32)
    z_q = jax.random.randint(kz, (B, N), 0, 8).astype(jnp.float32)
    pcds_coord = jnp.stack([x_q, y_q, z_q], axis=-1)[..., None]          # (B,N,3,1)
    t_q = jax.random.randint(kt, (B, N), 0, CFG["rv_shape"][0]).astype(jnp.float32)
    p_q = jax.random.randint(kph, (B, N), 0, CFG["rv_shape"][1]).astype(jnp.float32)
    pcds_sphere_coord = jnp.stack([t_q, p_q], axis=-1)[..., None]        # (B,N,2,1)

    pred_sem, pred_offset, pred_hmap = infer(params, pcds_xyzi, pcds_coord,
                                             pcds_sphere_coord, CFG)
    jax.block_until_ready((pred_sem, pred_offset, pred_hmap))

    assert pred_sem.shape == (B, CFG["n_class"], N, 1)
    assert pred_offset.shape == (B, N, 3)
    assert pred_hmap.shape == (B, N, 1)
    print("KERNEL_OK")
</pallas_src>

<mosaic_0001>
module attributes {stable_mosaic.version = 11 : i64} {
  func.func @_mlp2_kernel(%arg0: i32, %arg1: memref<128x7xbf16, #tpu.memory_space<vmem>>, %arg2: memref<7x32xbf16, #tpu.memory_space<vmem>>, %arg3: memref<1x32xf32, #tpu.memory_space<vmem>>, %arg4: memref<32x32xbf16, #tpu.memory_space<vmem>>, %arg5: memref<1x32xf32, #tpu.memory_space<vmem>>, %arg6: memref<128x32xbf16, #tpu.memory_space<vmem>>) attributes {dimension_semantics = [#tpu.dimension_semantics<parallel>], iteration_bounds = array<i64: 2>, scalar_prefetch = 0 : i64, scratch_operands = 0 : i64, tpu.core_type = #tpu.core_type<tc>, window_params = [{transform_indices = @transform_0, window_bounds = array<i64: 128, 7>}, {pipeline_mode = #tpu.pipeline_mode<synchronous>, transform_indices = @transform_1, window_bounds = array<i64: 7, 32>}, {pipeline_mode = #tpu.pipeline_mode<synchronous>, transform_indices = @transform_2, window_bounds = array<i64: 1, 32>}, {pipeline_mode = #tpu.pipeline_mode<synchronous>, transform_indices = @transform_3, window_bounds = array<i64: 32, 32>}, {pipeline_mode = #tpu.pipeline_mode<synchronous>, transform_indices = @transform_4, window_bounds = array<i64: 1, 32>}, {transform_indices = @transform_5, window_bounds = array<i64: 128, 32>}]} {
    %c0 = arith.constant 0 : index
    %c0_0 = arith.constant 0 : index
    %0 = vector.load %arg1[%c0, %c0_0] : memref<128x7xbf16, #tpu.memory_space<vmem>>, vector<128x7xbf16>
    %c0_1 = arith.constant 0 : index
    %c0_2 = arith.constant 0 : index
    %1 = vector.load %arg2[%c0_1, %c0_2] : memref<7x32xbf16, #tpu.memory_space<vmem>>, vector<7x32xbf16>
    %cst = arith.constant dense<0.000000e+00> : vector<128x32xf32>
    %2 = tpu.matmul %0, %1, %cst {dimension_numbers = #tpu.dot_dimension_numbers<[1], [0], [0], [1], [0, 0, 1, 1], [], []>} : vector<128x7xbf16>, vector<7x32xbf16>, vector<128x32xf32> -> vector<128x32xf32>
    %c0_3 = arith.constant 0 : index
    %c0_4 = arith.constant 0 : index
    %3 = vector.load %arg3[%c0_3, %c0_4] : memref<1x32xf32, #tpu.memory_space<vmem>>, vector<1x32xf32>
    %4 = vector.broadcast %3 : vector<1x32xf32> to vector<128x32xf32>
    %5 = arith.addf %2, %4 : vector<128x32xf32>
    %cst_5 = arith.constant 0.000000e+00 : f32
    %6 = vector.broadcast %cst_5 : f32 to vector<128x32xf32>
    %7 = arith.maximumf %5, %6 : vector<128x32xf32>
    %8 = arith.truncf %7 : vector<128x32xf32> to vector<128x32xbf16>
    %c0_6 = arith.constant 0 : index
    %c0_7 = arith.constant 0 : index
    %9 = vector.load %arg4[%c0_6, %c0_7] : memref<32x32xbf16, #tpu.memory_space<vmem>>, vector<32x32xbf16>
    %cst_8 = arith.constant dense<0.000000e+00> : vector<128x32xf32>
    %10 = tpu.matmul %8, %9, %cst_8 {dimension_numbers = #tpu.dot_dimension_numbers<[1], [0], [0], [1], [0, 0, 1, 1], [], []>} : vector<128x32xbf16>, vector<32x32xbf16>, vector<128x32xf32> -> vector<128x32xf32>
    %c0_9 = arith.constant 0 : index
    %c0_10 = arith.constant 0 : index
    %11 = vector.load %arg5[%c0_9, %c0_10] : memref<1x32xf32, #tpu.memory_space<vmem>>, vector<1x32xf32>
    %12 = vector.broadcast %11 : vector<1x32xf32> to vector<128x32xf32>
    %13 = arith.addf %10, %12 : vector<128x32xf32>
    %cst_11 = arith.constant 0.000000e+00 : f32
    %14 = vector.broadcast %cst_11 : f32 to vector<128x32xf32>
    %15 = arith.maximumf %13, %14 : vector<128x32xf32>
    %16 = arith.truncf %15 : vector<128x32xf32> to vector<128x32xbf16>
    %c0_12 = arith.constant 0 : index
    %c0_13 = arith.constant 0 : index
    %17 = vector.load %arg6[%c0_12, %c0_13] : memref<128x32xbf16, #tpu.memory_space<vmem>>, vector<128x32xbf16>
    tpu.vector_store %arg6[%c0_12, %c0_13], %16 {strides = array<i32>} : memref<128x32xbf16, #tpu.memory_space<vmem>>, vector<128x32xbf16>,
    return
  }
  func.func @transform_0(%arg0: i32) -> (i32, i32) {
    %c0_i32 = arith.constant 0 : i32
    %c0_i32_0 = arith.constant 0 : i32
    return %arg0, %c0_i32 : i32, i32
  }
  func.func @transform_1(%arg0: i32) -> (i32, i32) {
    %c0_i32 = arith.constant 0 : i32
    %c0_i32_0 = arith.constant 0 : i32
    %c0_i32_1 = arith.constant 0 : i32
    return %c0_i32, %c0_i32_0 : i32, i32
  }
  func.func @transform_2(%arg0: i32) -> (i32, i32) {
    %c0_i32 = arith.constant 0 : i32
    %c0_i32_0 = arith.constant 0 : i32
    %c0_i32_1 = arith.constant 0 : i32
    return %c0_i32, %c0_i32_0 : i32, i32
  }
  func.func @transform_3(%arg0: i32) -> (i32, i32) {
    %c0_i32 = arith.constant 0 : i32
    %c0_i32_0 = arith.constant 0 : i32
    %c0_i32_1 = arith.constant 0 : i32
    return %c0_i32, %c0_i32_0 : i32, i32
  }
  func.func @transform_4(%arg0: i32) -> (i32, i32) {
    %c0_i32 = arith.constant 0 : i32
    %c0_i32_0 = arith.constant 0 : i32
    %c0_i32_1 = arith.constant 0 : i32
    return %c0_i32, %c0_i32_0 : i32, i32
  }
  func.func @transform_5(%arg0: i32) -> (i32, i32) {
    %c0_i32 = arith.constant 0 : i32
    %c0_i32_0 = arith.constant 0 : i32
    return %arg0, %c0_i32 : i32, i32
  }
}

</mosaic_0001>

<bundles_post_ra>
// kernel: tpu_custom_call.1
= control target key start
LH: loop header
LB: loop body
LE: loop exit
PB: predicated region body
PF: predicated region fallthrough
CT: control target
= control target key end

     0   :  { %s724_s18 = smov 0   ;;  %s831_s0 = inlined_call_operand.vmem [shape: bf16[256,7], index: 0, kind: input, shape index: {}]   ;;  %s832_s1 = inlined_call_operand.vmem [shape: bf16[7,32], index: 1, kind: input, shape index: {}]   ;;  %s833_s2 = inlined_call_operand.vmem [shape: f32[1,32], index: 2, kind: input, shape index: {}]   ;;  %s834_s3 = inlined_call_operand.vmem [shape: bf16[32,32], index: 3, kind: input, shape index: {}]   ;;  %s835_s4 = inlined_call_operand.vmem [shape: f32[1,32], index: 4, kind: input, shape index: {}]   ;;  %s836_s5 = inlined_call_operand.vmem [shape: bf16[256,32], index: 5, kind: output, shape index: {}]  }
   0x1 LB: > { %s594_s19 = sadd.s32 4294967295, %s691_s18   ;;  %p598_p0 = scmp.ge.s32.totalorder %s691_s18, 1  ;;  %s691_s18 = sphi %s724_s18, %s15_s18  }
   0x2   : > { %p188_p1 = scmp.lt.s32.totalorder %s691_s18, 3 }
   0x4   : > { %p189_p2 = pnand %p598_p0, %p188_p1 }
   0x5   : > { %s599_s22 = sshll.u32 (!%p189_p2), %s594_s19, 4 }
   0x6   : > { %192 = sbr.rel (%p189_p2) target bundleno = 418 (0x1a2), region = 40  ;;  %p217_p3 = scmp.lt.s32.totalorder (!%p189_p2), %s599_s22, 31 }
   0xb   : > { %v245_v0 = vld [vmem:[%s832_s1] sm:$0xf]  ;;  %vm315_vm0 = vcmask 1042432   ;;  %vm316_vm1 = vcmask 1043456   ;;  %v693_v1 = vmov 65535   ;;  %s838_s22 = smov (!%p217_p3, %s599_s22), 31 }
   0xc   : > { %v317_v2 = vsel %vm315_vm0, 4294967295, %v693_v1  ;;  %s600_s23 = sshll.u32 %s838_s22, 2  ;;  %vm290_vm2 = vcmask 56320   ;;  %v670_v13 = vld [vmem:[%s834_s3 + $0x8] sm:$0xff]  ;;  %v669_v14 = vld [vmem:[%s834_s3] sm:$0xff]  ;;  %vm415_vm3 = vcmask 261120  }
   0xd   : > { %v318_v3 = vsel %vm316_vm1, %v317_v2, 0  ;;  %s220_s26 = scalar_lea.vmem %s831_s0, %s600_s23  ;;  %446 = vmatpush.bf16.msra.mxu1 %v670_v13  ;;  %672 = vmatpush.bf16.msra.mxu2 %v670_v13  ;;  %v683_v16 = vld [vmem:[%s833_s2] ss:$0 sm:$0xff]  ;;  %s779_s12 = scalar_lea.vmem %s836_s5, %s600_s23  ;;  %vm521_vm4 = vcmask 257024  }
   0xe   : > { %v320_v4 = vand.u32 %v318_v3, %v245_v0  ;;  %v661_v5 = vld [vmem:[%s220_s26] sm:$0xff]  ;;  %v662_v6 = vld [vmem:[%s220_s26 + $0x8] sm:$0xff]  ;;  %v663_v7 = vld [vmem:[%s220_s26 + $0x10] sm:$0xff] }
   0xf   : > { %v666_v8 = vld [vmem:[%s220_s26 + $0x28] sm:$0xff]  ;;  %v664_v9 = vld [vmem:[%s220_s26 + $0x18] sm:$0xff]  ;;  %v667_v10 = vld [vmem:[%s220_s26 + $0x30] sm:$0xff] }
  0x10   : > { %329 = vmatpush.bf16.msra.mxu0 %v320_v4  ;;  %671 = vmatpush.bf16.msra.mxu3 %v320_v4  ;;  %v665_v11 = vld [vmem:[%s220_s26 + $0x20] sm:$0xff]  ;;  %v668_v12 = vld [vmem:[%s220_s26 + $0x38] sm:$0xff] }
  0x11   : > { %447 = vmatpush.bf16.msra.mxu1 %v669_v14  ;;  %673 = vmatpush.bf16.msra.mxu2 %v669_v14 }
  0x13   : > { %635 = vmatmul.msk.bf16.vlgmr.msra.gmra.mxu0 %vm290_vm2, %v661_v5  ;;  %640 = vmatmul.msk.bf16.vlgmr.msra.gmra.mxu3 %vm290_vm2, %v666_v8  ;;  %v771_v8 = vld [vmem:[%s835_s4] ss:$0 sm:$0xff] }
  0x23   : > { %636 = vmatmul.msk.bf16.gmra.mxu0 %vm290_vm2, %v662_v6  ;;  %641 = vmatmul.msk.bf16.gmra.mxu3 %vm290_vm2, %v667_v10 }
  0x33   : > { %637 = vmatmul.msk.bf16.gmra.mxu0 %vm290_vm2, %v663_v7  ;;  %642 = vmatmul.msk.bf16.gmra.mxu3 %vm290_vm2, %v668_v12 }
  0x43   : > { %638 = vmatmul.msk.bf16.gmra.mxu0 %vm290_vm2, %v664_v9 }
  0x53   : > { %639 = vmatmul.msk.bf16.gmra.mxu0 %vm290_vm2, %v665_v11 }
  0x90   : > { %v331_v15 = vpop.f32.mrf.mxu0 }
  0x91   : > { %v332_v17 = vadd.f32 %v683_v16, %v331_v15 }
  0x93   : > { %v371_v20 = vmax.f32 %v332_v17, 0.0 }
  0x96   : > { %v356_v45 = vpop.f32.mrf.mxu3 }
  0x97   : > { %v357_v54 = vadd.f32 %v683_v16, %v356_v45 }
  0x98   : > { %v333_v18 = vpop.f32.mrf.mxu0 }
  0x99   : > { %v334_v19 = vadd.f32 %v683_v16, %v333_v18  ;;  %v381_v56 = vmax.f32 %v357_v54, 0.0 }
  0x9b   : > { %v372_v21 = vmax.f32 %v334_v19, 0.0 }
  0x9d   : > { %v387_v22 = vpack.c.bf16 %v372_v21, %v371_v20 }
  0x9e   : > { %v358_v49 = vpop.f32.mrf.mxu3 }
  0x9f   : > { %651 = vmatmul.msk.bf16.vlgmr.msra.gmra.mxu1 %vm415_vm3, %v387_v22  ;;  %v359_v55 = vadd.f32 %v683_v16, %v358_v49 }
  0xa0   : > { %v336_v23 = vpop.f32.mrf.mxu0 }
  0xa1   : > { %v337_v24 = vadd.f32 %v683_v16, %v336_v23  ;;  %v382_v57 = vmax.f32 %v359_v55, 0.0 }
  0xa3   : > { %v373_v27 = vmax.f32 %v337_v24, 0.0  ;;  %v392_v58 = vpack.c.bf16 %v382_v57, %v381_v56 }
  0xa6   : > { %v361_v53 = vpop.f32.mrf.mxu3 }
  0xa7   : > { %v362_v60 = vadd.f32 %v683_v16, %v361_v53 }
  0xa8   : > { %v338_v25 = vpop.f32.mrf.mxu0 }
  0xa9   : > { %v339_v26 = vadd.f32 %v683_v16, %v338_v25  ;;  %v383_v63 = vmax.f32 %v362_v60, 0.0 }
  0xab   : > { %v374_v28 = vmax.f32 %v339_v26, 0.0 }
  0xad   : > { %v388_v29 = vpack.c.bf16 %v374_v28, %v373_v27 }
  0xae   : > { %v363_v59 = vpop.f32.mrf.mxu3 }
  0xaf   : > { %652 = vmatmul.msk.bf16.gmra.mxu1 %vm415_vm3, %v388_v29  ;;  %v364_v61 = vadd.f32 %v683_v16, %v363_v59 }
  0xb0   : > { %v341_v30 = vpop.f32.mrf.mxu0 }
  0xb1   : > { %v342_v31 = vadd.f32 %v683_v16, %v341_v30  ;;  %v384_v0 = vmax.f32 %v364_v61, 0.0 }
  0xb3   : > { %v375_v34 = vmax.f32 %v342_v31, 0.0  ;;  %v393_v1 = vpack.c.bf16 %v384_v0, %v383_v63 }
  0xb6   : > { %v366_v62 = vpop.f32.mrf.mxu3 }
  0xb7   : > { %v367_v3 = vadd.f32 %v683_v16, %v366_v62 }
  0xb8   : > { %v343_v32 = vpop.f32.mrf.mxu0 }
  0xb9   : > { %v344_v33 = vadd.f32 %v683_v16, %v343_v32  ;;  %v385_v5 = vmax.f32 %v367_v3, 0.0 }
  0xbb   : > { %v376_v35 = vmax.f32 %v344_v33, 0.0 }
  0xbd   : > { %v389_v36 = vpack.c.bf16 %v376_v35, %v375_v34 }
  0xbe   : > { %v368_v2 = vpop.f32.mrf.mxu3 }
  0xbf   : > { %653 = vmatmul.msk.bf16.gmra.mxu1 %vm415_vm3, %v389_v36  ;;  %v369_v4 = vadd.f32 %v683_v16, %v368_v2 }
  0xc0   : > { %v346_v37 = vpop.f32.mrf.mxu0 }
  0xc1   : > { %v347_v38 = vadd.f32 %v683_v16, %v346_v37  ;;  %v386_v6 = vmax.f32 %v369_v4, 0.0 }
  0xc3   : > { %v377_v41 = vmax.f32 %v347_v38, 0.0  ;;  %v394_v7 = vpack.c.bf16 %v386_v6, %v385_v5 }
  0xc8   : > { %v348_v39 = vpop.f32.mrf.mxu0 }
  0xc9   : > { %v349_v40 = vadd.f32 %v683_v16, %v348_v39 }
  0xcb   : > { %v378_v42 = vmax.f32 %v349_v40, 0.0 }
  0xcd   : > { %v390_v43 = vpack.c.bf16 %v378_v42, %v377_v41 }
  0xcf   : > { %654 = vmatmul.msk.bf16.gmra.mxu1 %vm415_vm3, %v390_v43 }
  0xd0   : > { %v351_v44 = vpop.f32.mrf.mxu0 }
  0xd1   : > { %v352_v46 = vadd.f32 %v683_v16, %v351_v44 }
  0xd3   : > { %v379_v50 = vmax.f32 %v352_v46, 0.0 }
  0xd8   : > { %v353_v47 = vpop.f32.mrf.mxu0 }
  0xd9   : > { %v354_v48 = vadd.f32 %v683_v16, %v353_v47 }
  0xdb   : > { %v380_v51 = vmax.f32 %v354_v48, 0.0 }
  0xdd   : > { %v391_v52 = vpack.c.bf16 %v380_v51, %v379_v50 }
  0xdf   : > { %655 = vmatmul.msk.bf16.vlgmr.msra.gmra.mxu2 %vm415_vm3, %v391_v52 }
  0xef   : > { %656 = vmatmul.msk.bf16.gmra.mxu2 %vm415_vm3, %v392_v58 }
  0xff   : > { %657 = vmatmul.msk.bf16.gmra.mxu2 %vm415_vm3, %v393_v1 }
 0x10f   : > { %658 = vmatmul.msk.bf16.gmra.mxu2 %vm415_vm3, %v394_v7 }
 0x11c   : > { %v449_v9 = vpop.f32.mrf.mxu1 }
 0x11d   : > { %v450_v10 = vadd.f32 %v771_v8, %v449_v9 }
 0x11f   : > { %v489_v11 = vmax.f32 %v450_v10, 0.0 }
 0x121   : > { %v505_v12 = vpack.c.bf16 %v489_v11, %v489_v11 }
 0x123   : > { %522 = vst.msk [vmem:[%s779_s12] sm:$0xf] %vm521_vm4, %v505_v12 }
 0x124   : > { %v451_v13 = vpop.f32.mrf.mxu1 }
 0x125   : > { %v452_v14 = vadd.f32 %v771_v8, %v451_v13 }
 0x127   : > { %v490_v15 = vmax.f32 %v452_v14, 0.0 }
 0x129   : > { %v506_v16 = vpack.c.bf16 %v490_v15, %v490_v15 }
 0x12b   : > { %523 = vst.msk [vmem:[%s779_s12 + $0x4] sm:$0xf] %vm521_vm4, %v506_v16 }
 0x12c   : > { %v454_v17 = vpop.f32.mrf.mxu1 }
 0x12d   : > { %v455_v18 = vadd.f32 %v771_v8, %v454_v17 }
 0x12f   : > { %v491_v19 = vmax.f32 %v455_v18, 0.0 }
 0x131   : > { %v507_v20 = vpack.c.bf16 %v491_v19, %v491_v19 }
 0x133   : > { %524 = vst.msk [vmem:[%s779_s12 + $0x8] sm:$0xf] %vm521_vm4, %v507_v20 }
 0x134   : > { %v456_v21 = vpop.f32.mrf.mxu1 }
 0x135   : > { %v457_v22 = vadd.f32 %v771_v8, %v456_v21 }
 0x137   : > { %v492_v23 = vmax.f32 %v457_v22, 0.0 }
 0x139   : > { %v508_v24 = vpack.c.bf16 %v492_v23, %v492_v23 }
 0x13b   : > { %525 = vst.msk [vmem:[%s779_s12 + $0xc] sm:$0xf] %vm521_vm4, %v508_v24 }
 0x13c   : > { %v459_v25 = vpop.f32.mrf.mxu1 }
 0x13d   : > { %v460_v26 = vadd.f32 %v771_v8, %v459_v25 }
 0x13f   : > { %v493_v27 = vmax.f32 %v460_v26, 0.0 }
 0x141   : > { %v509_v28 = vpack.c.bf16 %v493_v27, %v493_v27 }
 0x143   : > { %526 = vst.msk [vmem:[%s779_s12 + $0x10] sm:$0xf] %vm521_vm4, %v509_v28 }
 0x144   : > { %v461_v29 = vpop.f32.mrf.mxu1 }
 0x145   : > { %v462_v30 = vadd.f32 %v771_v8, %v461_v29 }
 0x147   : > { %v494_v31 = vmax.f32 %v462_v30, 0.0 }
 0x149   : > { %v510_v32 = vpack.c.bf16 %v494_v31, %v494_v31 }
 0x14b   : > { %527 = vst.msk [vmem:[%s779_s12 + $0x14] sm:$0xf] %vm521_vm4, %v510_v32 }
 0x14c   : > { %v464_v33 = vpop.f32.mrf.mxu1 }
 0x14d   : > { %v465_v34 = vadd.f32 %v771_v8, %v464_v33 }
 0x14f   : > { %v495_v35 = vmax.f32 %v465_v34, 0.0 }
 0x151   : > { %v511_v36 = vpack.c.bf16 %v495_v35, %v495_v35 }
 0x153   : > { %528 = vst.msk [vmem:[%s779_s12 + $0x18] sm:$0xf] %vm521_vm4, %v511_v36 }
 0x154   : > { %v466_v37 = vpop.f32.mrf.mxu1 }
 0x155   : > { %v467_v38 = vadd.f32 %v771_v8, %v466_v37 }
 0x157   : > { %v496_v39 = vmax.f32 %v467_v38, 0.0 }
 0x159   : > { %v512_v40 = vpack.c.bf16 %v496_v39, %v496_v39 }
 0x15b   : > { %529 = vst.msk [vmem:[%s779_s12 + $0x1c] sm:$0xf] %vm521_vm4, %v512_v40 }
 0x162   : > { %v469_v41 = vpop.f32.mrf.mxu2 }
 0x163   : > { %v470_v42 = vadd.f32 %v771_v8, %v469_v41 }
 0x165   : > { %v497_v43 = vmax.f32 %v470_v42, 0.0 }
 0x167   : > { %v513_v44 = vpack.c.bf16 %v497_v43, %v497_v43 }
 0x169   : > { %530 = vst.msk [vmem:[%s779_s12 + $0x20] sm:$0xf] %vm521_vm4, %v513_v44 }
 0x16a   : > { %v471_v45 = vpop.f32.mrf.mxu2 }
 0x16b   : > { %v472_v46 = vadd.f32 %v771_v8, %v471_v45 }
 0x16d   : > { %v498_v47 = vmax.f32 %v472_v46, 0.0 }
 0x16f   : > { %v514_v48 = vpack.c.bf16 %v498_v47, %v498_v47 }
 0x171   : > { %531 = vst.msk [vmem:[%s779_s12 + $0x24] sm:$0xf] %vm521_vm4, %v514_v48 }
 0x172   : > { %v474_v49 = vpop.f32.mrf.mxu2 }
 0x173   : > { %v475_v50 = vadd.f32 %v771_v8, %v474_v49 }
 0x175   : > { %v499_v51 = vmax.f32 %v475_v50, 0.0 }
 0x177   : > { %v515_v52 = vpack.c.bf16 %v499_v51, %v499_v51 }
 0x179   : > { %532 = vst.msk [vmem:[%s779_s12 + $0x28] sm:$0xf] %vm521_vm4, %v515_v52 }
 0x17a   : > { %v476_v53 = vpop.f32.mrf.mxu2 }
 0x17b   : > { %v477_v54 = vadd.f32 %v771_v8, %v476_v53 }
 0x17d   : > { %v500_v55 = vmax.f32 %v477_v54, 0.0 }
 0x17f   : > { %v516_v56 = vpack.c.bf16 %v500_v55, %v500_v55 }
 0x181   : > { %533 = vst.msk [vmem:[%s779_s12 + $0x2c] sm:$0xf] %vm521_vm4, %v516_v56 }
 0x182   : > { %v479_v57 = vpop.f32.mrf.mxu2 }
 0x183   : > { %v480_v58 = vadd.f32 %v771_v8, %v479_v57 }
 0x185   : > { %v501_v59 = vmax.f32 %v480_v58, 0.0 }
 0x187   : > { %v517_v60 = vpack.c.bf16 %v501_v59, %v501_v59 }
 0x189   : > { %534 = vst.msk [vmem:[%s779_s12 + $0x30] sm:$0xf] %vm521_vm4, %v517_v60 }
 0x18a   : > { %v481_v61 = vpop.f32.mrf.mxu2 }
 0x18b   : > { %v482_v62 = vadd.f32 %v771_v8, %v481_v61 }
 0x18d   : > { %v502_v63 = vmax.f32 %v482_v62, 0.0 }
 0x18f   : > { %v518_v0 = vpack.c.bf16 %v502_v63, %v502_v63 }
 0x191   : > { %535 = vst.msk [vmem:[%s779_s12 + $0x34] sm:$0xf] %vm521_vm4, %v518_v0 }
 0x192   : > { %v484_v1 = vpop.f32.mrf.mxu2 }
 0x193   : > { %v485_v2 = vadd.f32 %v771_v8, %v484_v1 }
 0x195   : > { %v503_v3 = vmax.f32 %v485_v2, 0.0 }
 0x197   : > { %v519_v4 = vpack.c.bf16 %v503_v3, %v503_v3 }
 0x199   : > { %536 = vst.msk [vmem:[%s779_s12 + $0x38] sm:$0xf] %vm521_vm4, %v519_v4 }
 0x19a   : > { %v486_v5 = vpop.f32.mrf.mxu2 }
 0x19b   : > { %v487_v6 = vadd.f32 %v771_v8, %v486_v5 }
 0x19d   : > { %v504_v7 = vmax.f32 %v487_v6, 0.0 }
 0x19f   : > { %v520_v9 = vpack.c.bf16 %v504_v7, %v504_v7 }
 0x1a1   : > { %537 = vst.msk [vmem:[%s779_s12 + $0x3c] sm:$0xf] %vm521_vm4, %v520_v9 }
 0x1a2 PF: > { %s15_s18 = sadd.s32 1, %s691_s18  }
 0x1a3   : > { %p12_p4 = scmp.ge.s32.totalorder %s15_s18, 4  }
 0x1a5   :  { %14 = sbr.rel (!%p12_p4) target bundleno = 1 (0x1), region = 70 }

</bundles_post_ra>
